<compile_context>
chip_gen: v7x
topology: tpu7x:2x2x1
jax: 0.10.0
libtpu: 0.0.40
codegen_flags: <defaults>
</compile_context>

<pallas_src>
import functools
import math

import jax
import jax.numpy as jnp
from jax.experimental import pallas as pl
from jax.experimental.pallas import tpu as pltpu


def _policy_kernel(ma_ref, state_ref, w_ref, eps_ref, out_ref, *, S, H, A):
    x = state_ref[...]                       # (B, S)
    eps = eps_ref[...]                       # (B, A)
    max_action = ma_ref[0, 0]                # SMEM scalar

    # Static slices of the packed parameter slab (all row offsets that matter
    # for the matmuls -- 0, S, S+H -- are sublane-aligned; bias rows are
    # single-row sublane selects starting at lane 0).
    w1 = w_ref[0:S, 0:H]                     # (S, H)
    w2 = w_ref[S:S + H, 0:H]                 # (H, H)
    wh = w_ref[S + H:S + 2 * H, 0:2 * A]     # (H, 2A)  fused mu|log_sigma head
    b_row = S + 2 * H
    b1 = w_ref[b_row:b_row + 1, 0:H]         # (1, H)
    b2 = w_ref[b_row + 1:b_row + 2, 0:H]     # (1, H)
    bh = w_ref[b_row + 2:b_row + 3, 0:2 * A] # (1, 2A)

    # trunk: Linear -> ReLU, Linear -> ReLU  (n_hidden = 2)
    h = jnp.maximum(jnp.dot(x, w1, preferred_element_type=jnp.float32) + b1, 0.0)
    h = jnp.maximum(jnp.dot(h, w2, preferred_element_type=jnp.float32) + b2, 0.0)

    # fused heads: one matmul, slice mu / log_sigma in-register
    head = jnp.dot(h, wh, preferred_element_type=jnp.float32) + bh   # (B, 2A)
    mu = head[:, 0:A]
    log_sigma = jnp.clip(head[:, A:2 * A], -5.0, 2.0)
    sigma = jnp.exp(log_sigma)

    # rsample (eps == 0 reproduces the deterministic branch: action = mu)
    action = mu + sigma * eps
    t = jnp.tanh(action)
    tt = t * t

    # log_prob: Normal(mu, sigma).log_prob(action).sum(-1)
    #           - log(1 - tanh(a)^2 + 1e-6).sum(-1)
    # with (action - mu)/sigma == eps and -0.5*log(2*pi) hoisted out of the sum.
    neg_half_log_2pi = -0.5 * math.log(2.0 * math.pi)
    elt = -0.5 * (eps * eps) - log_sigma - jnp.log(1.0 - tt + 1e-6)
    lp = jnp.sum(elt, axis=-1, keepdims=True) + (A * neg_half_log_2pi)   # (B, 1)

    act = t * max_action                                                 # (B, A)

    # Single lane-dense output slab: act | lp | zero pad -> one unmasked store.
    B = act.shape[0]
    W = out_ref.shape[1]
    pad = jnp.zeros((B, W - (A + 1)), jnp.float32)
    out_ref[...] = jnp.concatenate([act, lp, pad], axis=1).astype(out_ref.dtype)


def mlp_policy_forward(state, w_slab, eps, max_action, *, S, H, A):
    """Returns (tanh_action * max_action, log_prob).  log_prob has shape (B,)."""
    B = state.shape[0]
    Bp = ((B + 7) // 8) * 8                  # full sublane tiles for (B, .) blocks
    if Bp != B:
        state = jnp.pad(state, ((0, Bp - B), (0, 0)))
        eps = jnp.pad(eps, ((0, Bp - B), (0, 0)))

    ma = jnp.full((1, 1), max_action, jnp.float32)
    kernel = functools.partial(_policy_kernel, S=S, H=H, A=A)
    vmem = pl.BlockSpec(memory_space=pltpu.MemorySpace.VMEM)
    smem = pl.BlockSpec(memory_space=pltpu.MemorySpace.SMEM)

    out = pl.pallas_call(
        kernel,
        in_specs=[smem, vmem, vmem, vmem],
        out_specs=vmem,
        out_shape=jax.ShapeDtypeStruct((Bp, 128), jnp.float32),
    )(ma, state, w_slab, eps)

    tanh_action = out[:B, 0:A]
    log_prob = out[:B, A]
    return tanh_action, log_prob


def init_params(key, state_dim, action_dim, hidden_dim):
    """Deterministic init mirroring the module's __init__ (shapes & init style).

    Weights are stored transposed vs PyTorch: (in_features, out_features).
    """
    k1, k2, k3, k4, k5, k6 = jax.random.split(key, 6)

    def linear_w(k, fan_in, fan_out):
        bound = 1.0 / jnp.sqrt(fan_in)
        return jax.random.uniform(k, (fan_in, fan_out), jnp.float32, -bound, bound)

    return {
        # trunk weights: default-style uniform, biases constant 0.1
        "w1": linear_w(k1, state_dim, hidden_dim),
        "b1": jnp.full((1, hidden_dim), 0.1, jnp.float32),
        "w2": linear_w(k2, hidden_dim, hidden_dim),
        "b2": jnp.full((1, hidden_dim), 0.1, jnp.float32),
        # heads: uniform(-0.001, 0.001) for weights and biases
        "wmu": jax.random.uniform(k3, (hidden_dim, action_dim), jnp.float32, -0.001, 0.001),
        "bmu": jax.random.uniform(k4, (1, action_dim), jnp.float32, -0.001, 0.001),
        "wls": jax.random.uniform(k5, (hidden_dim, action_dim), jnp.float32, -0.001, 0.001),
        "bls": jax.random.uniform(k6, (1, action_dim), jnp.float32, -0.001, 0.001),
    }


def pack_params(params):
    """Pack ALL weights and biases into one lane-dense (rows, 128) slab (done once).

    Layout (S=state_dim, H=hidden_dim, A=action_dim):
      rows 0     : S       -> w1            (cols 0:H)
      rows S     : S+H     -> w2            (cols 0:H)
      rows S+H   : S+2H    -> [wmu | wls]   (cols 0:2A)
      row  S+2H            -> b1            (cols 0:H)
      row  S+2H+1          -> b2            (cols 0:H)
      row  S+2H+2          -> [bmu | bls]   (cols 0:2A)
      remaining rows zero-padded up to a multiple of 8.
    """
    width = 128

    def pad_cols(w):
        return jnp.pad(w, ((0, 0), (0, width - w.shape[1])))

    whead = jnp.concatenate([params["wmu"], params["wls"]], axis=1)   # (H, 2A)
    bhead = jnp.concatenate([params["bmu"], params["bls"]], axis=1)   # (1, 2A)
    slab = jnp.concatenate(
        [pad_cols(params["w1"]), pad_cols(params["w2"]), pad_cols(whead),
         pad_cols(params["b1"]), pad_cols(params["b2"]), pad_cols(bhead)],
        axis=0)
    rows = slab.shape[0]
    rows_p = ((rows + 7) // 8) * 8
    return jnp.pad(slab, ((0, rows_p - rows), (0, 0)))


def _reference_forward(state, params, eps, max_action=1.0):
    h = jnp.maximum(state @ params["w1"] + params["b1"], 0.0)
    h = jnp.maximum(h @ params["w2"] + params["b2"], 0.0)
    mu = h @ params["wmu"] + params["bmu"]
    log_sigma = jnp.clip(h @ params["wls"] + params["bls"], -5.0, 2.0)
    sigma = jnp.exp(log_sigma)
    action = mu + sigma * eps
    tanh_action = jnp.tanh(action)
    z = (action - mu) / sigma
    lp = jnp.sum(-0.5 * z * z - log_sigma - 0.5 * jnp.log(2.0 * jnp.pi), axis=-1)
    lp = lp - jnp.sum(jnp.log(1.0 - tanh_action ** 2 + 1e-6), axis=-1)
    return tanh_action * max_action, lp


if __name__ == "__main__":
    # Small shapes consistent with the module: batch=8, state_dim=16,
    # hidden_dim=32, action_dim=4, n_hidden=2, max_action=1.0
    B, S, H, A = 8, 16, 32, 4
    max_action = 1.0

    key = jax.random.PRNGKey(0)
    k_params, k_state, k_eps = jax.random.split(key, 3)

    params = init_params(k_params, S, A, H)
    w_slab = pack_params(params)

    state = jax.random.normal(k_state, (B, S), jnp.float32)
    eps = jax.random.normal(k_eps, (B, A), jnp.float32)  # rsample noise
    # (passing eps = zeros reproduces the `deterministic=True` branch)

    tanh_action, log_prob = mlp_policy_forward(
        state, w_slab, eps, max_action, S=S, H=H, A=A)
    tanh_action = jax.block_until_ready(tanh_action)
    log_prob = jax.block_until_ready(log_prob)

    # sanity check against a pure-JAX reference
    ref_action, ref_lp = _reference_forward(state, params, eps, max_action)
    assert jnp.allclose(tanh_action, ref_action, rtol=1e-4, atol=1e-5)
    assert jnp.allclose(log_prob, ref_lp, rtol=1e-4, atol=1e-4)

    print("KERNEL_OK")
</pallas_src>

<mosaic_0001>
module attributes {stable_mosaic.version = 11 : i64} {
  func.func @_policy_kernel(%arg0: memref<1x1xf32, #tpu.memory_space<smem>>, %arg1: memref<8x16xf32, #tpu.memory_space<vmem>>, %arg2: memref<88x128xf32, #tpu.memory_space<vmem>>, %arg3: memref<8x4xf32, #tpu.memory_space<vmem>>, %arg4: memref<8x128xf32, #tpu.memory_space<vmem>>) attributes {dimension_semantics = [], scalar_prefetch = 0 : i64, scratch_operands = 0 : i64, tpu.core_type = #tpu.core_type<tc>} {
    %c0 = arith.constant 0 : index
    %c0_0 = arith.constant 0 : index
    %0 = vector.load %arg1[%c0, %c0_0] : memref<8x16xf32, #tpu.memory_space<vmem>>, vector<8x16xf32>
    %c0_1 = arith.constant 0 : index
    %c0_2 = arith.constant 0 : index
    %1 = vector.load %arg3[%c0_1, %c0_2] : memref<8x4xf32, #tpu.memory_space<vmem>>, vector<8x4xf32>
    %c0_3 = arith.constant 0 : index
    %c0_4 = arith.constant 0 : index
    %2 = memref.load %arg0[%c0_3, %c0_4] : memref<1x1xf32, #tpu.memory_space<smem>>
    %c0_5 = arith.constant 0 : index
    %c0_6 = arith.constant 0 : index
    %3 = vector.load %arg2[%c0_5, %c0_6] : memref<88x128xf32, #tpu.memory_space<vmem>>, vector<16x32xf32>
    %c16 = arith.constant 16 : index
    %c0_7 = arith.constant 0 : index
    %4 = vector.load %arg2[%c16, %c0_7] : memref<88x128xf32, #tpu.memory_space<vmem>>, vector<32x32xf32>
    %c48 = arith.constant 48 : index
    %c0_8 = arith.constant 0 : index
    %5 = vector.load %arg2[%c48, %c0_8] : memref<88x128xf32, #tpu.memory_space<vmem>>, vector<32x8xf32>
    %c80 = arith.constant 80 : index
    %c0_9 = arith.constant 0 : index
    %6 = vector.load %arg2[%c80, %c0_9] : memref<88x128xf32, #tpu.memory_space<vmem>>, vector<1x32xf32>
    %c81 = arith.constant 81 : index
    %c0_10 = arith.constant 0 : index
    %7 = vector.load %arg2[%c81, %c0_10] : memref<88x128xf32, #tpu.memory_space<vmem>>, vector<1x32xf32>
    %c82 = arith.constant 82 : index
    %c0_11 = arith.constant 0 : index
    %8 = vector.load %arg2[%c82, %c0_11] : memref<88x128xf32, #tpu.memory_space<vmem>>, vector<1x8xf32>
    %cst = arith.constant dense<0.000000e+00> : vector<8x32xf32>
    %9 = tpu.matmul %0, %3, %cst {dimension_numbers = #tpu.dot_dimension_numbers<[1], [0], [0], [1], [0, 0, 1, 1], [], []>} : vector<8x16xf32>, vector<16x32xf32>, vector<8x32xf32> -> vector<8x32xf32>
    %10 = vector.broadcast %6 : vector<1x32xf32> to vector<8x32xf32>
    %11 = arith.addf %9, %10 : vector<8x32xf32>
    %cst_12 = arith.constant 0.000000e+00 : f32
    %12 = vector.broadcast %cst_12 : f32 to vector<8x32xf32>
    %13 = arith.maximumf %11, %12 : vector<8x32xf32>
    %cst_13 = arith.constant dense<0.000000e+00> : vector<8x32xf32>
    %14 = tpu.matmul %13, %4, %cst_13 {dimension_numbers = #tpu.dot_dimension_numbers<[1], [0], [0], [1], [0, 0, 1, 1], [], []>} : vector<8x32xf32>, vector<32x32xf32>, vector<8x32xf32> -> vector<8x32xf32>
    %15 = vector.broadcast %7 : vector<1x32xf32> to vector<8x32xf32>
    %16 = arith.addf %14, %15 : vector<8x32xf32>
    %cst_14 = arith.constant 0.000000e+00 : f32
    %17 = vector.broadcast %cst_14 : f32 to vector<8x32xf32>
    %18 = arith.maximumf %16, %17 : vector<8x32xf32>
    %cst_15 = arith.constant dense<0.000000e+00> : vector<8x8xf32>
    %19 = tpu.matmul %18, %5, %cst_15 {dimension_numbers = #tpu.dot_dimension_numbers<[1], [0], [0], [1], [0, 0, 1, 1], [], []>} : vector<8x32xf32>, vector<32x8xf32>, vector<8x8xf32> -> vector<8x8xf32>
    %20 = vector.broadcast %8 : vector<1x8xf32> to vector<8x8xf32>
    %21 = arith.addf %19, %20 : vector<8x8xf32>
    %22 = vector.extract_strided_slice %21 {offsets = [0, 0], sizes = [8, 4], strides = [1, 1]} : vector<8x8xf32> to vector<8x4xf32>
    %23 = vector.extract_strided_slice %21 {offsets = [0, 4], sizes = [8, 4], strides = [1, 1]} : vector<8x8xf32> to vector<8x4xf32>
    %cst_16 = arith.constant -5.000000e+00 : f32
    %cst_17 = arith.constant 2.000000e+00 : f32
    %24 = vector.broadcast %cst_16 : f32 to vector<8x4xf32>
    %25 = arith.maximumf %24, %23 : vector<8x4xf32>
    %26 = vector.broadcast %cst_17 : f32 to vector<8x4xf32>
    %27 = arith.minimumf %26, %25 : vector<8x4xf32>
    %28 = math.exp %27 : vector<8x4xf32>
    %29 = arith.mulf %28, %1 : vector<8x4xf32>
    %30 = arith.addf %22, %29 : vector<8x4xf32>
    %31 = math.tanh %30 : vector<8x4xf32>
    %32 = arith.mulf %31, %31 : vector<8x4xf32>
    %33 = arith.mulf %1, %1 : vector<8x4xf32>
    %cst_18 = arith.constant -5.000000e-01 : f32
    %34 = vector.broadcast %cst_18 : f32 to vector<8x4xf32>
    %35 = arith.mulf %34, %33 : vector<8x4xf32>
    %36 = arith.subf %35, %27 : vector<8x4xf32>
    %cst_19 = arith.constant 1.000000e+00 : f32
    %37 = vector.broadcast %cst_19 : f32 to vector<8x4xf32>
    %38 = arith.subf %37, %32 : vector<8x4xf32>
    %cst_20 = arith.constant 9.99999997E-7 : f32
    %39 = vector.broadcast %cst_20 : f32 to vector<8x4xf32>
    %40 = arith.addf %38, %39 : vector<8x4xf32>
    %41 = math.log %40 : vector<8x4xf32>
    %42 = arith.subf %36, %41 : vector<8x4xf32>
    %cst_21 = arith.constant dense<0.000000e+00> : vector<8xf32>
    %43 = vector.multi_reduction <add>, %42, %cst_21 [1] : vector<8x4xf32> to vector<8xf32>
    %44 = vector.shape_cast %43 : vector<8xf32> to vector<8x1xf32>
    %cst_22 = arith.constant -3.67575407 : f32
    %45 = vector.broadcast %cst_22 : f32 to vector<8x1xf32>
    %46 = arith.addf %44, %45 : vector<8x1xf32>
    %47 = vector.broadcast %2 : f32 to vector<8x4xf32>
    %48 = arith.mulf %31, %47 : vector<8x4xf32>
    %cst_23 = arith.constant 0.000000e+00 : f32
    %49 = vector.broadcast %cst_23 : f32 to vector<8x123xf32>
    %50 = tpu.concatenate %48, %46, %49 in 1 : vector<8x4xf32>, vector<8x1xf32>, vector<8x123xf32> -> vector<8x128xf32>
    %c0_24 = arith.constant 0 : index
    %c0_25 = arith.constant 0 : index
    %51 = vector.load %arg4[%c0_24, %c0_25] : memref<8x128xf32, #tpu.memory_space<vmem>>, vector<8x128xf32>
    tpu.vector_store %arg4[%c0_24, %c0_25], %50 {strides = array<i32>} : memref<8x128xf32, #tpu.memory_space<vmem>>, vector<8x128xf32>,
    return
  }
}

</mosaic_0001>

<bundles_post_ra>
// kernel: tpu_custom_call.1
= control target key start
LH: loop header
LB: loop body
LE: loop exit
PB: predicated region body
PF: predicated region fallthrough
CT: control target
= control target key end

     0   :  { %10 = vsyncpa [#allocation4], 0  ;;  %s534_s0 = inlined_call_operand.<no memory space> [shape: f32[1,1], index: 0, kind: input, shape index: {}]   ;;  %s535_s1 = inlined_call_operand.vmem [shape: f32[8,16], index: 1, kind: input, shape index: {}]   ;;  %s536_s2 = inlined_call_operand.hbm [shape: f32[88,128], index: 2, kind: input, shape index: {}]   ;;  %s537_s3 = inlined_call_operand.vmem [shape: f32[8,4], index: 3, kind: input, shape index: {}]   ;;  %s538_s4 = inlined_call_operand.hbm [shape: f32[8,128], index: 4, kind: output, shape index: {}]  }
   0x1   :  { %11 = vsyncpa [#allocation5], 0  ;;  %s464_s15 = smov [#allocation3]   ;;  %s416_s19 = scalar_lea.hbm %s536_s2, 1408 }
   0x2   :  { %s21_s16 = sshll.u32 %s464_s15, 4  ;;  %p417_p0 = scmp.ne.s32.totalorder %s536_s2, %s416_s19  ;;  %s22_s16 = int_to_ptr.vmem [resolvable:$true] %s21_s16 }
   0x3   :  { %p420_p1 = scmp.lt.u32.totalorder %s416_s19, %s536_s2 }
   0x5   :  { %p422_p2 = pnand %p420_p1, %p417_p0 }
   0x7   :  { %425 = shalt.err (!%p422_p2)
}
   0x8   :  { %s426_s24 = scalar_lea.vmem %s22_s16, 1408  ;;  %p431_p4 = scmp.lt.s32.totalorder %s22_s16, %s22_s16 }
   0x9   :  { %p427_p3 = scmp.ne.s32.totalorder %s22_s16, %s426_s24  ;;  %p432_p5 = scmp.lt.s32.totalorder %s426_s24, %s426_s24 }
   0xb   :  { %p433_p6 = por %p432_p5, %p431_p4 }
   0xd   :  { %p434_p7 = pnand %p433_p6, %p427_p3 }
   0xf   :  { %437 = shalt.err (!%p434_p7)
}
  0x10   :  { %s465_s25 = smov 128   ;;  %s466_s26 = smov 8  }
  0x11   :  { %27 = dma.hbm_to_vmem [thread:$0]  %s536_s2, 1408, %s22_s16, [#allocation4], %s465_s25, %s465_s25, %s466_s26  }
  0x12   :  { %460 = dma.done.wait [#allocation4], 1408  }
  0x13   :  { %461 = vsyncadd [#allocation4], 4294965888  ;;  %v467_v0 = vmov 0.0|0.0   ;;  %vm468_vm0 = vmmov 0   ;;  %v469_v1 = vmov 0.0   ;;  %v36_v2 = vld [vmem:[#allocation3] sm:$0xff]  ;;  %v317_v53 = vstv %s534_s0 }
  0x14   :  { %386 = vmatprep.subr.bf16.mxu0 %v467_v0  ;;  %361 = vmatprep.mubr.msk.f32.mxu0 %vm468_vm0, %v469_v1  ;;  %v37_v3 = vld [vmem:[#allocation3 + $0x8] sm:$0xff]  ;;  %v38_v5 = vld [vmem:[#allocation3 + $0x10] sm:$0xff]  ;;  %v39_v6 = vld [vmem:[#allocation3 + $0x18] sm:$0xff]  ;;  %vm53_vm1 = vcmask 130048   ;;  %vm132_vm2 = vcmask 261120   ;;  %s470_s5 = smov 4  }
  0x15   :  { %389 = vmatprep.subr.bf16.mxu1 %v467_v0  ;;  %372 = vmatprep.mubr.msk.f32.mxu1 %vm468_vm0, %v469_v1  ;;  %v387_v4 = vpack.c.bf16 %v37_v3, %v36_v2  ;;  %v390_v7 = vpack.c.bf16 %v39_v6, %v38_v5  ;;  %v33_v8 = vld [vmem:[%s535_s1] sm:$0xff]  ;;  %v41_v10 = vld [vmem:[#allocation3 + $0x28] sm:$0xff]  ;;  %v42_v12 = vld [vmem:[#allocation3 + $0x30] sm:$0xff]  ;;  %s471_s6 = smov 124   ;;  %vm312_vm3 = vcmask 31744   ;;  %s472_s8 = smov [#allocation6]  }
  0x16   :  { %v40_v9 = vld [vmem:[#allocation3 + $0x20] sm:$0xff]  ;;  %v43_v13 = vld [vmem:[#allocation3 + $0x38] sm:$0xff]  ;;  %v338_v15 = vld [vmem:[#allocation3 + $0x50] ss:$0 sm:$0xff]  ;;  %s329_s9 = sshll.u32 %s472_s8, 4  ;;  %vm320_vm4 = vcmask 39936   ;;  %s330_s9 = int_to_ptr.vmem [resolvable:$true] %s329_s9 }
  0x17   :  { %388 = vmatpush3.bf16.msra.mxu0 %v387_v4  ;;  %391 = vmatpush3.bf16.msra.mxu1 %v390_v7  ;;  %v393_v11 = vpack.c.bf16 %v41_v10, %v40_v9  ;;  %v396_v14 = vpack.c.bf16 %v43_v13, %v42_v12  ;;  %v44_v20 = vld [vmem:[#allocation3 + $0x40] sm:$0xff]  ;;  %v45_v21 = vld [vmem:[#allocation3 + $0x48] sm:$0xff]  ;;  %v340_v24 = vld [vmem:[#allocation3 + $0x51] ss:$0 sm:$0xff]  ;;  %s438_s10 = scalar_lea.vmem %s330_s9, 128  ;;  %p443_p9 = scmp.lt.s32.totalorder %s330_s9, %s330_s9 }
  0x18   :  { %395 = vmatprep.subr.bf16.mxu0 %v467_v0  ;;  %392 = vmatprep.subr.bf16.mxu1 %v467_v0  ;;  %v399_v22 = vpack.c.bf16 %v45_v21, %v44_v20  ;;  %v34_v23 = vld [vmem:[%s537_s3] sm:$0xff]  ;;  %v342_v29 = vld [vmem:[#allocation3 + $0x52] ss:$0 sm:$0xff]  ;;  %p439_p8 = scmp.ne.s32.totalorder %s330_s9, %s438_s10  ;;  %p444_p10 = scmp.lt.s32.totalorder %s438_s10, %s438_s10 }
  0x19   :  { %289 = vrot.lane.b32.xlu0 %v34_v23, %s470_s5  ;;  %v300_v45 = vmul.f32 %v34_v23, %v34_v23 }
  0x1a   :  { %362 = vmatmul.mubr.msk.f32.vlgmr.msra.gmra.mrb[0].mxu0 %vm53_vm1, %v33_v8  ;;  %p445_p11 = por %p444_p10, %p443_p9 }
  0x1b   :  { %383 = vmatprep.mubr.msk.f32.mxu0 %vm468_vm0, %v469_v1  ;;  %394 = vmatpush3.bf16.msra.mxu1 %v393_v11  ;;  %v301_v46 = vmul.f32 -0.5, %v300_v45 }
  0x1c   :  { %397 = vmatpush3.bf16.msra.mxu0 %v396_v14  ;;  %p446_p12 = pnand %p445_p11, %p439_p8 }
  0x1d   :  { %398 = vmatprep.subr.bf16.mxu0 %v467_v0 }
  0x20   :  { %400 = vmatpush3.bf16.msra.mxu0 %v399_v22 }
  0x8b   :  { %v290_v36 = vpop.permute.xlu0 %289 }
  0xed   :  { %v123_v16 = vpop.f32.mrb[0].mxu0 }
  0xee   :  { %v124_v17 = vadd.f32 %v338_v15, %v123_v16  ;;  %v363_v18 = vpop.f32.mrb[1].mxu0 }
  0xf0   :  { %v127_v19 = vmax.f32 %v124_v17, 0.0 }
  0xf2   :  { %373 = vmatmul.mubr.msk.f32.vlgmr.msra.gmra.mrb[0].mxu1 %vm132_vm2, %v127_v19 }
 0x1c5   :  { %v202_v25 = vpop.f32.mrb[0].mxu1 }
 0x1c6   :  { %v203_v26 = vadd.f32 %v340_v24, %v202_v25  ;;  %v374_v27 = vpop.f32.mrb[1].mxu1 }
 0x1c8   :  { %v206_v28 = vmax.f32 %v203_v26, 0.0 }
 0x1ca   :  { %384 = vmatmul.mubr.msk.f32.vlgmr.msra.gmra.mrb[2].mxu0 %vm132_vm2, %v206_v28 }
 0x29d   :  { %v280_v30 = vpop.f32.mrb[2].mxu0 }
 0x29e   :  { %v281_v31 = vadd.f32 %v342_v29, %v280_v30  ;;  %v385_v32 = vpop.f32.mrb[3].mxu0 }
 0x2a0   :  { %v284_v33 = vmax.f32 %v281_v31, -5.0 }
 0x2a2   :  { %v285_v34 = vmin.f32 %v284_v33, 2.0 }
 0x2a4   :  { %303 = vrot.lane.b32.xlu1 %v285_v34, %s471_s6  ;;  %v286_v35 = vmul.f32 1.442695, %v285_v34 }
 0x2a6   :  { %410 = vpow2.f32 %v286_v35 }
 0x2b0   :  { %v411_v37 = vpop.eup %410 }
 0x2b1   :  { %v292_v38 = vmul.f32 %v411_v37, %v290_v36 }
 0x2b3   :  { %294 = vrot.lane.b32.xlu0 %v292_v38, %s471_s6 }
 0x316   :  { %v304_v47 = vpop.permute.xlu1 %303 }
 0x317   :  { %v306_v49 = vsub.f32 %v301_v46, %v304_v47 }
 0x325   :  { %v295_v39 = vpop.permute.xlu0 %294 }
 0x326   :  { %v297_v40 = vadd.f32 %v295_v39, %v281_v31 }
 0x328   :  { %412 = vtanh.f32 %v297_v40 }
 0x332   :  { %v413_v41 = vpop.eup %412 }
 0x333   :  { %v299_v42 = vmul.f32 %v413_v41, %v413_v41  ;;  %v318_v56 = vmul.f32 %v413_v41, %v317_v53 }
 0x335   :  { %v307_v43 = vsub.f32 1.0, %v299_v42 }
 0x337   :  { %v308_v44 = vadd.f32 1e-06, %v307_v43 }
 0x339   :  { %414 = vlog2.f32 %v308_v44 }
 0x343   :  { %v415_v48 = vpop.eup %414 }
 0x344   :  { %v310_v50 = vmul.f32 0.6931472, %v415_v48 }
 0x346   :  { %v311_v51 = vsub.f32 %v306_v49, %v310_v50 }
 0x348   :  { %v313_v52 = vsel %vm312_vm3, %v311_v51, 0.0 }
 0x349   :  { %314 = vadd.xlane.f32.xlu1 %v313_v52 }
 0x3d6   :  { %v315_v54 = vpop.xlane.xlu1 %314 }
 0x3d7   :  { %v316_v55 = vadd.f32 -3.675754, %v315_v54 }
 0x3d9   :  { %v319_v57 = vsel %vm312_vm3, %v318_v56, %v316_v55 }
 0x3da   :  { %v321_v58 = vsel %vm320_vm4, %v319_v57, 0.0 }
 0x3db   :  { %322 = vst [vmem:[#allocation6] sm:$0xff] %v321_v58 }
 0x3dc   :  { %449 = shalt.err (!%p446_p12)
}
 0x3dd   :  { %s450_s0 = scalar_lea.hbm %s538_s4, 128 }
 0x3de   :  { %p451_p13 = scmp.ne.s32.totalorder %s538_s4, %s450_s0  ;;  %p454_p0 = scmp.lt.u32.totalorder %s450_s0, %s538_s4 }
 0x3e0   :  { %p456_p1 = pnand %p454_p0, %p451_p13 }
 0x3e2   :  { %459 = shalt.err (!%p456_p1)
}
 0x3e3   :  { %332 = dma.vmem_to_hbm [thread:$0]  %s330_s9, 128, %s538_s4, [#allocation5]  }
 0x3e4   :  { %462 = dma.done.wait [#allocation5], 128  }
 0x3e5   :  { %463 = vsyncadd [#allocation5], 4294967168 }
 0x3e6   :  { %336 = vsyncpa [#allocation4], 1 }
 0x3e7   :  { %337 = vsyncpa [#allocation5], 1 }

</bundles_post_ra>
